<compile_context>
chip_gen: v7x
topology: tpu7x:2x2x1
jax: 0.10.0
libtpu: 0.0.40
codegen_flags: <defaults>
</compile_context>

<pallas_src>
import jax
import jax.numpy as jnp
from jax.experimental import pallas as pl
from jax.experimental.pallas import tpu as pltpu


def _round_up(n, m):
    return ((n + m - 1) // m) * m


def _cdiv(a, b):
    return (a + b - 1) // b


def _kline_kernel(flags_ref, m_ref, base_ref, o_ref):
    """Refs:
      flags_ref : (TBp, 2*pack) f32  -- packed [bull, bear] flags, pack rows
                                        of the original batch per physical row
      m_ref     : (2*pack, pack*H) f32 -- block-diagonal [d0; d1] expansion
      base_ref  : (1, pack*H) f32      -- pre-tiled no-pattern baseline w2 + b
      o_ref     : (TBp, pack*H) f32    -- lane-dense packed output
    The per-lane-group broadcast of d0/d1 is done by the MXU (pure slack); the
    VPU only does one add + relu per output vreg; stores are full-lane.
    """
    acc = jnp.dot(flags_ref[...], m_ref[...], preferred_element_type=jnp.float32)
    o_ref[...] = jnp.maximum(acc + base_ref[...], jnp.float32(0.0))


def _pick_pack(H):
    """Rows packed per physical row so the output last dim is a multiple of 128."""
    for p in (1, 2, 4, 8):
        if (p * H) % 128 == 0:
            return p
    # TODO(synk): H with no small pack factor (e.g. 48) keeps masked partial
    # stores; pad H up to a multiple of 128/pack there if it ever matters.
    return 1


def _compute_flags(x):
    """NaN->0, then bullish/bearish engulfing flags as a fused XLA pass, (B, 2)."""
    xc = jnp.where(jnp.isnan(x), jnp.float32(0.0), x.astype(jnp.float32))
    op = xc[:, 0]
    cl = xc[:, 3]
    zero = jnp.zeros((1,), jnp.float32)
    po = jnp.concatenate([zero, op[:-1]])   # prev open  (0 sentinel at row 0)
    pc = jnp.concatenate([zero, cl[:-1]])   # prev close (0 sentinel at row 0)
    bull = (pc < po) & (cl > op) & (op < pc) & (cl > po)
    bear = (pc > po) & (cl < op) & (op > pc) & (cl < po)
    return jnp.stack([bull, bear], axis=1).astype(jnp.float32)      # (B, 2)


def _folded_weights(w, b, pack):
    """Folded affine weights: block-diagonal M (2*pack, pack*H), base (1, pack*H)."""
    wf = w.astype(jnp.float32)
    bf = b.astype(jnp.float32)
    H = wf.shape[0]
    d0 = wf[:, 0] - wf[:, 2]                 # bullish delta
    d1 = wf[:, 1] - wf[:, 2]                 # bearish delta
    base = wf[:, 2] + bf                     # no-pattern baseline
    # M[2*j + t, j*H + h] = [d0; d1][t, h], zero elsewhere (block-diagonal).
    eye = jnp.eye(pack, dtype=jnp.float32)                            # (pack, pack)
    D = jnp.stack([d0, d1], axis=0)                                   # (2, H)
    M = (eye[:, None, :, None] * D[None, :, None, :]).reshape(2 * pack, pack * H)
    base_tiled = jnp.tile(base, (pack,))[None, :]                     # (1, pack*H)
    return M, base_tiled


def _kline_pallas_impl(x, w, b):
    B = x.shape[0]
    H = w.shape[0]
    pack = _pick_pack(H)
    rg = 8 * pack                      # row group: keeps packed sublane dim 8-aligned

    flags = _compute_flags(x)                       # (B, 2), fused XLA, ~free
    M, base_tiled = _folded_weights(w, b, pack)

    # Tile selection: ~2 MiB output tiles (past ~85% of HBM roofline), but keep
    # >= 2 grid steps whenever the batch allows so v7x's two TensorCores both
    # get work; pad only up to the chosen tiling, never a whole tile.
    Bp0 = _round_up(B, rg)
    target_tile_bytes = 2 * 1024 * 1024
    tb_cap = _round_up(max(rg, min(32768, target_tile_bytes // (4 * H))), rg)
    n_tiles = _cdiv(Bp0, tb_cap)
    if Bp0 >= 2 * rg:
        n_tiles = max(n_tiles, 2)
    TB = _round_up(_cdiv(Bp0, n_tiles), rg)
    n_tiles = _cdiv(Bp0, TB)
    Bp = n_tiles * TB                  # total padding < n_tiles * rg rows

    if Bp != B:
        # Padded rows have zero flags -> relu(base); written then sliced off.
        flags = jnp.pad(flags, ((0, Bp - B), (0, 0)))

    Rp = Bp // pack                    # packed rows total
    TBp = TB // pack                   # packed rows per tile (multiple of 8)
    flags_packed = flags.reshape(Rp, 2 * pack)      # free row-major reshape

    # VMEM: out tile <= ~2 MiB (double-buffered ~4 MiB), inputs tiny -> well
    # under v7x's 32 MiB scoped / 64 MiB physical and v5e/v6e's 128 MiB.
    out_packed = pl.pallas_call(
        _kline_kernel,
        out_shape=jax.ShapeDtypeStruct((Rp, pack * H), jnp.float32),
        grid=(n_tiles,),
        in_specs=[
            pl.BlockSpec((TBp, 2 * pack), lambda i: (i, 0)),
            pl.BlockSpec((2 * pack, pack * H), lambda i: (0, 0)),  # VMEM-resident
            pl.BlockSpec((1, pack * H), lambda i: (0, 0)),         # VMEM-resident
        ],
        out_specs=pl.BlockSpec((TBp, pack * H), lambda i: (i, 0)),
        compiler_params=pltpu.CompilerParams(
            # Tiles are independent (prev open/close arrive as data), so the
            # batch axis is parallel -> sharded across v7x's 2 TensorCores.
            dimension_semantics=("parallel",),
        ),
    )(flags_packed, M, base_tiled)

    return out_packed.reshape(Bp, H)[:B]


_kline_pallas = jax.jit(_kline_pallas_impl)


def _kline_xla_impl(x, w, b):
    # Small-batch bypass: same folded math, pure fused XLA (no pallas_call
    # dispatch).  This is the right path for MetaSACCritic's production B~8;
    # ideally this layer is fused into the surrounding AdaptiveModulationMLP.
    flags = _compute_flags(x)
    M, base_tiled = _folded_weights(w, b, 1)
    return jnp.maximum(flags @ M + base_tiled, jnp.float32(0.0))


_kline_xla = jax.jit(_kline_xla_impl)


def kline_pattern_layer(x, w, b, *, min_pallas_batch=1024):
    """x: (B,4) OHLC; w: (H,3) PyTorch Linear(3,H) weight; b: (H,) bias."""
    B = x.shape[0]
    if B == 0:
        return jnp.zeros((0, w.shape[0]), jnp.float32)
    if B < min_pallas_batch:
        return _kline_xla(x, w, b)
    return _kline_pallas(x, w, b)


def reference_forward(x, w, b):
    """Pure-JAX mirror of the PyTorch KLinePatternLayer.forward."""
    x = jnp.where(jnp.isnan(x), 0.0, x)
    B = x.shape[0]
    open_p, close_p = x[:, 0], x[:, 3]
    patterns = jnp.zeros((B, 3), jnp.float32)
    if B > 1:
        po, pc = open_p[:-1], close_p[:-1]
        co, cc = open_p[1:], close_p[1:]
        bull = (pc < po) & (cc > co) & (co < pc) & (cc > po)
        bear = (pc > po) & (cc < co) & (co > pc) & (cc < po)
        nop = ~(bull | bear)
        patterns = patterns.at[1:, 0].set(bull.astype(jnp.float32))
        patterns = patterns.at[1:, 1].set(bear.astype(jnp.float32))
        patterns = patterns.at[1:, 2].set(nop.astype(jnp.float32))
    patterns = patterns.at[0, 2].set(1.0)
    return jax.nn.relu(patterns @ w.T + b)


if __name__ == "__main__":
    hidden_dim = 32
    batch = 8

    key = jax.random.PRNGKey(0)
    kx, kw, kb = jax.random.split(key, 3)

    # (batch, 4) OHLC candles; inject NaNs to exercise the NaN-clean path.
    x = jax.random.normal(kx, (batch, 4), dtype=jnp.float32)
    x = x.at[2, 1].set(jnp.nan)
    x = x.at[5, 3].set(jnp.nan)

    # Deterministic synthetic Linear(3, hidden_dim) params (PyTorch layout).
    bound = 1.0 / jnp.sqrt(3.0)
    w = jax.random.uniform(kw, (hidden_dim, 3), jnp.float32, -bound, bound)
    b = jax.random.uniform(kb, (hidden_dim,), jnp.float32, -bound, bound)

    # Force the Pallas path at the tiny demo batch (the auto-dispatcher would
    # otherwise take the small-batch XLA bypass).
    out = jax.block_until_ready(kline_pattern_layer(x, w, b, min_pallas_batch=0))
    ref = reference_forward(x, w, b)
    assert out.shape == (batch, hidden_dim)
    assert jnp.allclose(out, ref, atol=1e-5, rtol=1e-5)

    # Auto-dispatch (small-batch XLA bypass) agrees as well.
    out_bypass = jax.block_until_ready(kline_pattern_layer(x, w, b))
    assert jnp.allclose(out_bypass, ref, atol=1e-5, rtol=1e-5)

    # Larger, non-aligned batch: exercises minimal padding (2057 -> 2112, not
    # 4096), the >=2-tile parallel grid, and the MXU expansion path.
    x2 = jax.random.normal(jax.random.PRNGKey(1), (2057, 4), dtype=jnp.float32)
    out2 = jax.block_until_ready(kline_pattern_layer(x2, w, b))
    ref2 = reference_forward(x2, w, b)
    assert out2.shape == (2057, hidden_dim)
    assert jnp.allclose(out2, ref2, atol=1e-5, rtol=1e-5)

    print("KERNEL_OK")
</pallas_src>

<mosaic_0001>
module attributes {stable_mosaic.version = 11 : i64} {
  func.func @_kline_kernel(%arg0: i32, %arg1: memref<8x8xf32, #tpu.memory_space<vmem>>, %arg2: memref<8x128xf32, #tpu.memory_space<vmem>>, %arg3: memref<1x128xf32, #tpu.memory_space<vmem>>, %arg4: memref<8x128xf32, #tpu.memory_space<vmem>>) attributes {dimension_semantics = [#tpu.dimension_semantics<parallel>], iteration_bounds = array<i64: 1>, scalar_prefetch = 0 : i64, scratch_operands = 0 : i64, tpu.core_type = #tpu.core_type<tc>, window_params = [{transform_indices = @transform_0, window_bounds = array<i64: 8, 8>}, {pipeline_mode = #tpu.pipeline_mode<synchronous>, transform_indices = @transform_1, window_bounds = array<i64: 8, 128>}, {pipeline_mode = #tpu.pipeline_mode<synchronous>, transform_indices = @transform_2, window_bounds = array<i64: 1, 128>}, {transform_indices = @transform_3, window_bounds = array<i64: 8, 128>}]} {
    %c0 = arith.constant 0 : index
    %c0_0 = arith.constant 0 : index
    %0 = vector.load %arg1[%c0, %c0_0] : memref<8x8xf32, #tpu.memory_space<vmem>>, vector<8x8xf32>
    %c0_1 = arith.constant 0 : index
    %c0_2 = arith.constant 0 : index
    %1 = vector.load %arg2[%c0_1, %c0_2] : memref<8x128xf32, #tpu.memory_space<vmem>>, vector<8x128xf32>
    %cst = arith.constant dense<0.000000e+00> : vector<8x128xf32>
    %2 = tpu.matmul %0, %1, %cst {dimension_numbers = #tpu.dot_dimension_numbers<[1], [0], [0], [1], [0, 0, 1, 1], [], []>} : vector<8x8xf32>, vector<8x128xf32>, vector<8x128xf32> -> vector<8x128xf32>
    %c0_3 = arith.constant 0 : index
    %c0_4 = arith.constant 0 : index
    %3 = vector.load %arg3[%c0_3, %c0_4] : memref<1x128xf32, #tpu.memory_space<vmem>>, vector<1x128xf32>
    %4 = vector.broadcast %3 : vector<1x128xf32> to vector<8x128xf32>
    %5 = arith.addf %2, %4 : vector<8x128xf32>
    %cst_5 = arith.constant 0.000000e+00 : f32
    %6 = vector.broadcast %cst_5 : f32 to vector<8x128xf32>
    %7 = arith.maximumf %5, %6 : vector<8x128xf32>
    %c0_6 = arith.constant 0 : index
    %c0_7 = arith.constant 0 : index
    %8 = vector.load %arg4[%c0_6, %c0_7] : memref<8x128xf32, #tpu.memory_space<vmem>>, vector<8x128xf32>
    tpu.vector_store %arg4[%c0_6, %c0_7], %7 {strides = array<i32>} : memref<8x128xf32, #tpu.memory_space<vmem>>, vector<8x128xf32>,
    return
  }
  func.func @transform_0(%arg0: i32) -> (i32, i32) {
    %c0_i32 = arith.constant 0 : i32
    %c0_i32_0 = arith.constant 0 : i32
    return %arg0, %c0_i32 : i32, i32
  }
  func.func @transform_1(%arg0: i32) -> (i32, i32) {
    %c0_i32 = arith.constant 0 : i32
    %c0_i32_0 = arith.constant 0 : i32
    %c0_i32_1 = arith.constant 0 : i32
    return %c0_i32, %c0_i32_0 : i32, i32
  }
  func.func @transform_2(%arg0: i32) -> (i32, i32) {
    %c0_i32 = arith.constant 0 : i32
    %c0_i32_0 = arith.constant 0 : i32
    %c0_i32_1 = arith.constant 0 : i32
    return %c0_i32, %c0_i32_0 : i32, i32
  }
  func.func @transform_3(%arg0: i32) -> (i32, i32) {
    %c0_i32 = arith.constant 0 : i32
    %c0_i32_0 = arith.constant 0 : i32
    return %arg0, %c0_i32 : i32, i32
  }
}

</mosaic_0001>

<bundles_post_ra>
// kernel: tile.8
= control target key start
LH: loop header
LB: loop body
LE: loop exit
PB: predicated region body
PF: predicated region fallthrough
CT: control target
= control target key end

     0   :  { %s22_s0 = inlined_call_operand.vmem [shape: f32[32], index: 0, kind: input, shape index: {}]   ;;  %s23_s1 = inlined_call_operand.vmem [shape: f32[4,32], index: 1, kind: output, shape index: {}]  }
   0x1   :  { %v4_v0 = vld [vmem:[%s22_s0] ss:$0 sm:$0xff] }
   0x2   :  { %5 = vst [vmem:[%s23_s1] sm:$0xf] %v4_v0 }

// kernel: tile.9
= control target key start
LH: loop header
LB: loop body
LE: loop exit
PB: predicated region body
PF: predicated region fallthrough
CT: control target
= control target key end

     0   :  { %vm7_vm0 = vcmask 261120   ;;  %s37_s8 = smov 32   ;;  %s38_s9 = smov 64   ;;  %vm13_vm1 = vcmask 1048320   ;;  %vm19_vm2 = vcmask 785920   ;;  %vm25_vm3 = vcmask 523520   ;;  %s55_s0 = inlined_call_operand.vmem [shape: f32[4,32], index: 0, kind: input, shape index: {}]   ;;  %s56_s1 = inlined_call_operand.vmem [shape: f32[1,128], index: 1, kind: output, shape index: {}]  }
   0x1   :  { %v4_v0 = vld [vmem:[%s55_s0] sm:$0xf]  ;;  %s36_s0 = smov 96  }
   0x2   :  { %5 = vst [vmem:[#allocation1] sm:$0xf] %v4_v0 }
   0x9   :  { %v10_v1 = vld [vmem:[#allocation1 + $0x3] sm:$0x1]   ;;  %v22_v2 = vld [vmem:[#allocation1 + $0x1] sm:$0x1]   ;;  %v6_v3 = vld [vmem:[#allocation1] sm:$0x1]  }
   0xa   :  { %11 = vrot.lane.b32.xlu0 %v10_v1, %s36_s0  ;;  %23 = vrot.lane.b32.xlu1 %v22_v2, %s37_s8  ;;  %v16_v4 = vld [vmem:[#allocation1 + $0x2] sm:$0x1]   ;;  %8 = vst.msk [vmem:[#allocation0] sm:$0x1] %vm7_vm0, %v6_v3  }
   0xe   :  { %17 = vrot.lane.b32.xlu0 %v16_v4, %s38_s9 }
  0x7c   :  { %v12_v5 = vpop.permute.xlu0 %11   ;;  %v24_v6 = vpop.permute.xlu1 %23  }
  0x7d   :  { %14 = vst.msk [vmem:[#allocation0] sm:$0x1] %vm13_vm1, %v12_v5  }
  0x80   :  { %v18_v7 = vpop.permute.xlu0 %17  }
  0x81   :  { %20 = vst.msk [vmem:[#allocation0] sm:$0x1] %vm19_vm2, %v18_v7  }
  0x82   :  { %26 = vst.msk [vmem:[#allocation0] sm:$0x1] %vm25_vm3, %v24_v6  }
  0x89   :  { %v30_v8 = vld [vmem:[#allocation0] sm:$0x1] }
  0x8a   :  { %32 = vst [vmem:[%s56_s1] sm:$0x1] %v30_v8 }

// kernel: _kline_pallas_impl.1
= control target key start
LH: loop header
LB: loop body
LE: loop exit
PB: predicated region body
PF: predicated region fallthrough
CT: control target
= control target key end

     0   :  { %vm23_vm0 = vcmask 64512   ;;  %v114_v0 = vmov 0.0   ;;  %vm115_vm1 = vmmov 0   ;;  %s148_s1 = inlined_call_operand.vmem [shape: f32[8,128], index: 1, kind: input, shape index: {}]   ;;  %s149_s0 = inlined_call_operand.vmem [shape: f32[8,8], index: 0, kind: input, shape index: {}]   ;;  %s150_s2 = inlined_call_operand.vmem [shape: f32[1,128], index: 2, kind: input, shape index: {}]   ;;  %s151_s3 = inlined_call_operand.vmem [shape: f32[8,128], index: 3, kind: output, shape index: {}]  }
   0x1   :  { %107 = vmatprep.subr.mxu0 %v114_v0  ;;  %v15_v1 = vld [vmem:[%s148_s1] sm:$0xff]  ;;  %109 = vmatprep.mubr.msk.f32.mxu0 %vm115_vm1, %v114_v0 }
   0x2   :  { %v14_v2 = vld [vmem:[%s149_s0] sm:$0xff]  ;;  %108 = vmatpush3.msra.mxu0 %v15_v1 }
   0x3   :  { %110 = vmatmul.mubr.msk.f32.vlgmr.msra.gmra.mrb[0].mxu0 %vm23_vm0, %v14_v2  ;;  %v103_v3 = vld [vmem:[%s150_s2] ss:$0 sm:$0xff] }
  0xd6   :  { %v93_v4 = vpop.f32.mrb[0].mxu0 }
  0xd7   :  { %v94_v5 = vadd.f32 %v103_v3, %v93_v4  ;;  %v111_v6 = vpop.f32.mrb[1].mxu0 }
  0xd9   :  { %v97_v7 = vmax.f32 %v94_v5, 0.0 }
  0xdb   :  { %98 = vst [vmem:[%s151_s3] sm:$0xff] %v97_v7 }

</bundles_post_ra>
